<compile_context>
chip_gen: v7x
topology: tpu7x:2x2x1
jax: 0.10.0
libtpu: 0.0.40
codegen_flags: <defaults>
</compile_context>

<pallas_src>
import jax
import jax.numpy as jnp
import numpy as np
from jax.experimental import pallas as pl
from jax.experimental.pallas import tpu as pltpu


def _cdiv(a, b):
    return (a + b - 1) // b


def _round_up(a, b):
    return _cdiv(a, b) * b


def _elu(x):
    # torch.nn.ELU(alpha=1.0); exp arg clamped so the untaken branch of
    # jnp.where never produces inf.
    return jnp.where(x > 0, x, jnp.exp(jnp.minimum(x, 0.0)) - 1.0)


# ------------------------------ Pallas kernel -------------------------------

def _make_gnn_kernel(H1, H2):
    def kernel(x_ref, adj_ref, w1_ref, w2_ref, vec_ref, pns_ref, sc_ref):
        x = x_ref[...]          # (Bt, N, F_in)   bf16
        adj = adj_ref[...]      # (Bt, N, N)      bf16 (0/1 -> exact)
        w1 = w1_ref[...]        # (Bt, F_in, H1)  bf16
        w2 = w2_ref[...]        # (Bt, H1, H2)    bf16
        vec = vec_ref[...].astype(jnp.float32)    # (Bt, 1, H1 + 3*H2)

        b1 = vec[:, :, 0:H1]                          # (Bt, 1, H1)
        b2 = vec[:, :, H1:H1 + H2]                    # (Bt, 1, H2)
        wout = vec[:, :, H1 + H2:H1 + 2 * H2]         # (Bt, 1, H2)
        wpn = vec[:, :, H1 + 2 * H2:H1 + 3 * H2]      # (Bt, 1, H2)

        # Alive-agent mask (reused by readout + masked softmax).
        alive = (jnp.max(adj.astype(jnp.float32), axis=-1, keepdims=True)
                 > 0.0).astype(jnp.float32)           # (Bt, N, 1)

        # ---- GIN layers:  h' = ELU(((A + I) h) W(s) + b(s)) ----------------
        agg = jnp.einsum('bnm,bmf->bnf', adj, x,
                         preferred_element_type=jnp.float32) + x.astype(jnp.float32)
        h = jnp.einsum('bnf,bfh->bnh', agg.astype(jnp.bfloat16), w1,
                       preferred_element_type=jnp.float32) + b1
        h = _elu(h)
        agg = jnp.einsum('bnm,bmh->bnh', adj, h.astype(jnp.bfloat16),
                         preferred_element_type=jnp.float32) + h
        h = jnp.einsum('bnh,bhk->bnk', agg.astype(jnp.bfloat16), w2,
                       preferred_element_type=jnp.float32) + b2
        h = _elu(h)                                   # (Bt, N, H2) f32

        # ---- readout: masked mean over alive agents (exact divide) ---------
        count = jnp.sum(alive, axis=1, keepdims=True)                  # (Bt,1,1)
        readout = jnp.sum(h * alive, axis=1, keepdims=True) / (count + 1e-10)

        # ---- global scalar: readout @ wout(s) -------------------------------
        sc_ref[...] = jnp.sum(readout * wout, axis=-1)                 # (Bt, 1)

        # ---- per-node logits + masked softmax over the node axis -----------
        # bpn(s) omitted: constant across nodes -> shift-invariant under softmax.
        per_node = jnp.sum(h * wpn, axis=-1)                           # (Bt, N)
        masked = per_node + (-1e10) * (1.0 - alive[:, :, 0])
        m = jnp.max(masked, axis=-1, keepdims=True)
        e = jnp.exp(masked - m)
        pns_ref[...] = e * pl.reciprocal(jnp.sum(e, axis=-1, keepdims=True),
                                         approx=True)                 # (Bt, N)
    return kernel


def _padded_block_bytes(bt, d0, d1, itemsize):
    """VMEM bytes of a (bt, d0, d1) block with (sublane, 128-lane) tiling."""
    sub = max(8, 32 // itemsize)          # 8 sublanes for f32, 16 for bf16
    return bt * _round_up(d0, sub) * _round_up(d1, 128) * itemsize


def gnn_pallas(x, adj, w1, w2, vec, *, max_bt=128):
    B, N, F_in = x.shape
    H1 = w1.shape[-1]
    H2 = w2.shape[-1]
    V = vec.shape[-1]

    # bf16 inputs (adj is 0/1 so exact); MXU accumulates in f32 in-kernel.
    x, adj, w1, w2, vec = [a.astype(jnp.bfloat16) for a in (x, adj, w1, w2, vec)]

    # Balanced batch tiling; >=2 grid steps once B > 64 (v7x megacore sharding);
    # Bt capped at max_bt=128 for VMEM headroom on all generations.
    if B <= 64:
        n_tiles, Bt = 1, B
    else:
        n_tiles = max(2, _cdiv(B, max_bt))
        Bt = _round_up(_cdiv(B, n_tiles), 8)
    B_pad = n_tiles * Bt
    pad = B_pad - B
    if pad:
        p3 = ((0, pad), (0, 0), (0, 0))
        x, adj, w1, w2, vec = [jnp.pad(a, p3) for a in (x, adj, w1, w2, vec)]

    # Padding-aware VMEM budget: double-buffered input/output blocks plus a
    # generous allowance for the f32 intermediates (agg / h / alive).
    in_blocks = ((N, F_in), (N, N), (F_in, H1), (H1, H2), (1, V))
    step_bytes = sum(_padded_block_bytes(Bt, d0, d1, 2) for d0, d1 in in_blocks)
    step_bytes += _padded_block_bytes(1, Bt, N, 4) + _padded_block_bytes(1, Bt, 1, 4)
    inter_bytes = 8 * Bt * _round_up(N, 8) * _round_up(max(F_in, H1, H2), 128) * 4
    vmem_limit = int(min(48 * 1024 * 1024,
                         max(24 * 1024 * 1024, 2 * step_bytes + inter_bytes)))

    im3 = lambda i: (i, 0, 0)
    im2 = lambda i: (i, 0)

    pns2d, sc2d = pl.pallas_call(
        _make_gnn_kernel(H1, H2),
        out_shape=(jax.ShapeDtypeStruct((B_pad, N), jnp.float32),
                   jax.ShapeDtypeStruct((B_pad, 1), jnp.float32)),
        grid_spec=pltpu.PrefetchScalarGridSpec(
            num_scalar_prefetch=0,
            grid=(n_tiles,),
            in_specs=[pl.BlockSpec((Bt, N, F_in), im3),   # x
                      pl.BlockSpec((Bt, N, N), im3),      # adj
                      pl.BlockSpec((Bt, F_in, H1), im3),  # W1(s)
                      pl.BlockSpec((Bt, H1, H2), im3),    # W2(s)
                      pl.BlockSpec((Bt, 1, V), im3)],     # packed b1|b2|wout|wpn
            out_specs=[pl.BlockSpec((Bt, N), im2),        # per-node softmax slab
                       pl.BlockSpec((Bt, 1), im2)]),      # global scalar column
        compiler_params=pltpu.CompilerParams(
            dimension_semantics=("parallel",),            # megacore on v7x
            vmem_limit_bytes=vmem_limit),
    )(x, adj, w1, w2, vec)
    return pns2d[:B], sc2d[:B]


# ------------------------- parameter setup (glue) ---------------------------

def _linear_init(key, fan_in, fan_out):
    k1, k2 = jax.random.split(key)
    bound = 1.0 / (fan_in ** 0.5)
    W = jax.random.uniform(k1, (fan_in, fan_out), jnp.float32, -bound, bound)
    b = jax.random.uniform(k2, (fan_out,), jnp.float32, -bound, bound)
    return W, b


def _mlp2(params, x):
    (W1, b1), (W2, b2) = params
    return jnp.maximum(x @ W1 + b1, 0.0) @ W2 + b2


def init_gnn_params(key, num_input_features, hidden_layers, state_dim, hypernet_embed):
    assert len(hidden_layers) == 2, "demo fixed to two GIN layers"
    H1, H2 = hidden_layers
    ks = jax.random.split(key, 12)
    params = {
        # per-layer hypernets (GIN layer weight/bias generators)
        "hyper_w1": (_linear_init(ks[0], state_dim, hypernet_embed),
                     _linear_init(ks[1], hypernet_embed, num_input_features * H1)),
        "hyper_b1": _linear_init(ks[2], state_dim, H1),
        "hyper_w2": (_linear_init(ks[3], state_dim, hypernet_embed),
                     _linear_init(ks[4], hypernet_embed, H1 * H2)),
        "hyper_b2": _linear_init(ks[5], state_dim, H2),
        # output hypernets (match the nn.Sequential shapes in GNN.__init__)
        "wout": (_linear_init(ks[6], state_dim, hypernet_embed),
                 _linear_init(ks[7], hypernet_embed, H2)),
        "wout_perNode": (_linear_init(ks[8], state_dim, hypernet_embed),
                         _linear_init(ks[9], hypernet_embed, H2)),
        "bout_perNode": (_linear_init(ks[10], state_dim, H2),
                         _linear_init(ks[11], H2, 1)),
    }
    return params


def _hypernet_weights(params, states, num_input_features, hidden_layers,
                      weights_operation=None):
    B = states.shape[0]
    H1, H2 = hidden_layers
    w1 = _mlp2(params["hyper_w1"], states).reshape(B, num_input_features, H1)
    b1 = (states @ params["hyper_b1"][0] + params["hyper_b1"][1]).reshape(B, 1, H1)
    w2 = _mlp2(params["hyper_w2"], states).reshape(B, H1, H2)
    b2 = (states @ params["hyper_b2"][0] + params["hyper_b2"][1]).reshape(B, 1, H2)
    wout = _mlp2(params["wout"], states).reshape(B, 1, H2)
    wpn = _mlp2(params["wout_perNode"], states).reshape(B, 1, H2)
    bpn = _mlp2(params["bout_perNode"], states).reshape(B, 1, 1)
    if weights_operation == 'abs':
        wout = jnp.abs(wout)
    elif weights_operation == 'clamp':
        wout = jnp.maximum(wout, 0.0)
    elif weights_operation is not None:
        raise NotImplementedError(
            'The operation {} on the weights not implemented!'.format(weights_operation))
    return w1, b1, w2, b2, wout, wpn, bpn


def _pack_vec(b1, b2, wout, wpn):
    # bpn(s) is intentionally excluded: it is constant across nodes and thus a
    # no-op under the node-axis softmax; V = H1 + 3*H2 (= 128 lanes for H=32).
    return jnp.concatenate([b1[:, 0], b2[:, 0], wout[:, 0], wpn[:, 0]],
                           axis=-1)[:, None, :]


def gnn_forward(params, input_features, adj, states, num_agents,
                num_input_features, hidden_layers, weights_operation=None):
    B, N, _ = input_features.shape
    w1, b1, w2, b2, wout, wpn, _bpn = _hypernet_weights(
        params, states, num_input_features, hidden_layers, weights_operation)
    vec = _pack_vec(b1, b2, wout, wpn)
    pns2d, sc2d = gnn_pallas(input_features, adj, w1, w2, vec)
    return pns2d.reshape(B, N, 1), sc2d.reshape(B, 1, 1)


# --------------- plain-JAX mirror of the kernel math (for checks) -----------

def gnn_kernel_math_ref(xb, adjb, w1b, w2b, vecb, H1, H2):
    """Mirrors the kernel (same bf16 casts / f32 accumulation, exact divides)."""
    vec = vecb.astype(jnp.float32)
    b1 = vec[:, :, 0:H1]
    b2 = vec[:, :, H1:H1 + H2]
    wout = vec[:, :, H1 + H2:H1 + 2 * H2]
    wpn = vec[:, :, H1 + 2 * H2:H1 + 3 * H2]
    alive = (jnp.max(adjb.astype(jnp.float32), axis=-1, keepdims=True)
             > 0.0).astype(jnp.float32)
    agg = jnp.einsum('bnm,bmf->bnf', adjb, xb,
                     preferred_element_type=jnp.float32) + xb.astype(jnp.float32)
    h = _elu(jnp.einsum('bnf,bfh->bnh', agg.astype(jnp.bfloat16), w1b,
                        preferred_element_type=jnp.float32) + b1)
    agg = jnp.einsum('bnm,bmh->bnh', adjb, h.astype(jnp.bfloat16),
                     preferred_element_type=jnp.float32) + h
    h = _elu(jnp.einsum('bnh,bhk->bnk', agg.astype(jnp.bfloat16), w2b,
                        preferred_element_type=jnp.float32) + b2)
    count = jnp.sum(alive, axis=1, keepdims=True)
    readout = jnp.sum(h * alive, axis=1, keepdims=True) / (count + 1e-10)
    scalar = jnp.sum(readout * wout, axis=-1)                    # (B, 1)
    per_node = jnp.sum(h * wpn, axis=-1)                         # (B, N)
    masked = per_node + (-1e10) * (1.0 - alive[:, :, 0])
    pns = jax.nn.softmax(masked, axis=-1)
    return pns, scalar


if __name__ == "__main__":
    B, N = 2, 8                       # batch, num_agents (nodes)
    F_IN = 16                         # num_input_features
    HIDDEN = (32, 32)                 # hidden_layers
    STATE_DIM = 24
    HYPERNET_EMBED = 32

    key = jax.random.PRNGKey(0)
    k_x, k_adj, k_s, k_p = jax.random.split(key, 4)

    input_features = jax.random.normal(k_x, (B, N, F_IN), jnp.float32)
    adj = (jax.random.uniform(k_adj, (B, N, N)) > 0.5).astype(jnp.float32)
    adj = adj.at[0, N - 1, :].set(0.0)   # one dead agent in batch 0 (tests alive mask)
    states = jax.random.normal(k_s, (B, STATE_DIM), jnp.float32)

    params = init_gnn_params(k_p, F_IN, HIDDEN, STATE_DIM, HYPERNET_EMBED)

    per_node_scalars, scalar_out = gnn_forward(
        params, input_features, adj, states, N, F_IN, HIDDEN)
    jax.block_until_ready((per_node_scalars, scalar_out))

    assert per_node_scalars.shape == (B, N, 1)
    assert scalar_out.shape == (B, 1, 1)

    # Logic check against a plain-JAX mirror with matching bf16 casts (the only
    # remaining differences are accumulation order + the approx softmax recip).
    w1, b1, w2, b2, wout, wpn, _bpn = _hypernet_weights(
        params, states, F_IN, HIDDEN, None)
    vec = _pack_vec(b1, b2, wout, wpn)
    to_bf = lambda a: a.astype(jnp.bfloat16)
    pns_ref, sc_ref = gnn_kernel_math_ref(
        to_bf(input_features), to_bf(adj), to_bf(w1), to_bf(w2), to_bf(vec),
        HIDDEN[0], HIDDEN[1])
    np.testing.assert_allclose(np.asarray(per_node_scalars[..., 0]),
                               np.asarray(pns_ref), rtol=2e-2, atol=2e-3)
    np.testing.assert_allclose(np.asarray(scalar_out[..., 0]),
                               np.asarray(sc_ref), rtol=2e-2, atol=2e-3)

    print("KERNEL_OK")
</pallas_src>

<mosaic_0001>
module attributes {stable_mosaic.version = 11 : i64} {
  func.func @kernel(%arg0: i32, %arg1: memref<2x8x16xbf16, #tpu.memory_space<vmem>>, %arg2: memref<2x8x8xbf16, #tpu.memory_space<vmem>>, %arg3: memref<2x16x32xbf16, #tpu.memory_space<vmem>>, %arg4: memref<2x32x32xbf16, #tpu.memory_space<vmem>>, %arg5: memref<2x1x128xbf16, #tpu.memory_space<vmem>>, %arg6: memref<2x8xf32, #tpu.memory_space<vmem>>, %arg7: memref<2x1xf32, #tpu.memory_space<vmem>>) attributes {dimension_semantics = [#tpu.dimension_semantics<parallel>], iteration_bounds = array<i64: 1>, scalar_prefetch = 0 : i64, scratch_operands = 0 : i64, tpu.core_type = #tpu.core_type<tc>, window_params = [{transform_indices = @transform_0, window_bounds = array<i64: 2, 8, 16>}, {transform_indices = @transform_1, window_bounds = array<i64: 2, 8, 8>}, {transform_indices = @transform_2, window_bounds = array<i64: 2, 16, 32>}, {transform_indices = @transform_3, window_bounds = array<i64: 2, 32, 32>}, {transform_indices = @transform_4, window_bounds = array<i64: 2, 1, 128>}, {transform_indices = @transform_5, window_bounds = array<i64: 2, 8>}, {transform_indices = @transform_6, window_bounds = array<i64: 2, 1>}]} {
    %c0 = arith.constant 0 : index
    %c0_0 = arith.constant 0 : index
    %c0_1 = arith.constant 0 : index
    %0 = vector.load %arg1[%c0, %c0_0, %c0_1] : memref<2x8x16xbf16, #tpu.memory_space<vmem>>, vector<2x8x16xbf16>
    %c0_2 = arith.constant 0 : index
    %c0_3 = arith.constant 0 : index
    %c0_4 = arith.constant 0 : index
    %1 = vector.load %arg2[%c0_2, %c0_3, %c0_4] : memref<2x8x8xbf16, #tpu.memory_space<vmem>>, vector<2x8x8xbf16>
    %c0_5 = arith.constant 0 : index
    %c0_6 = arith.constant 0 : index
    %c0_7 = arith.constant 0 : index
    %2 = vector.load %arg3[%c0_5, %c0_6, %c0_7] : memref<2x16x32xbf16, #tpu.memory_space<vmem>>, vector<2x16x32xbf16>
    %c0_8 = arith.constant 0 : index
    %c0_9 = arith.constant 0 : index
    %c0_10 = arith.constant 0 : index
    %3 = vector.load %arg4[%c0_8, %c0_9, %c0_10] : memref<2x32x32xbf16, #tpu.memory_space<vmem>>, vector<2x32x32xbf16>
    %c0_11 = arith.constant 0 : index
    %c0_12 = arith.constant 0 : index
    %c0_13 = arith.constant 0 : index
    %4 = vector.load %arg5[%c0_11, %c0_12, %c0_13] : memref<2x1x128xbf16, #tpu.memory_space<vmem>>, vector<2x1x128xbf16>
    %5 = arith.extf %4 : vector<2x1x128xbf16> to vector<2x1x128xf32>
    %6 = vector.extract_strided_slice %5 {offsets = [0, 0, 0], sizes = [2, 1, 32], strides = [1, 1, 1]} : vector<2x1x128xf32> to vector<2x1x32xf32>
    %7 = vector.extract_strided_slice %5 {offsets = [0, 0, 32], sizes = [2, 1, 32], strides = [1, 1, 1]} : vector<2x1x128xf32> to vector<2x1x32xf32>
    %8 = vector.extract_strided_slice %5 {offsets = [0, 0, 64], sizes = [2, 1, 32], strides = [1, 1, 1]} : vector<2x1x128xf32> to vector<2x1x32xf32>
    %9 = vector.extract_strided_slice %5 {offsets = [0, 0, 96], sizes = [2, 1, 32], strides = [1, 1, 1]} : vector<2x1x128xf32> to vector<2x1x32xf32>
    %10 = arith.extf %1 : vector<2x8x8xbf16> to vector<2x8x8xf32>
    %cst = arith.constant dense<0xFF800000> : vector<2x8xf32>
    %11 = vector.multi_reduction <maximumf>, %10, %cst [2] : vector<2x8x8xf32> to vector<2x8xf32>
    %12 = vector.shape_cast %11 : vector<2x8xf32> to vector<2x8x1xf32>
    %cst_14 = arith.constant 0.000000e+00 : f32
    %13 = vector.broadcast %cst_14 : f32 to vector<2x8x1xf32>
    %14 = arith.cmpf ogt, %12, %13 : vector<2x8x1xf32>
    %15 = arith.extui %14 : vector<2x8x1xi1> to vector<2x8x1xi32>
    %16 = arith.sitofp %15 : vector<2x8x1xi32> to vector<2x8x1xf32>
    "tpu.trace_start"() <{level = 10 : i32, message = "bnm,bmf->bnf"}> : () -> ()
    %cst_15 = arith.constant dense<0.000000e+00> : vector<2x8x16xf32>
    %17 = tpu.matmul %1, %0, %cst_15 {dimension_numbers = #tpu.dot_dimension_numbers<[2], [1], [1], [2], [0, 0, 0, 1, 1, 2], [0], [0]>} : vector<2x8x8xbf16>, vector<2x8x16xbf16>, vector<2x8x16xf32> -> vector<2x8x16xf32>
    "tpu.trace_stop"() : () -> ()
    %18 = arith.extf %0 : vector<2x8x16xbf16> to vector<2x8x16xf32>
    %19 = arith.addf %17, %18 : vector<2x8x16xf32>
    %20 = arith.truncf %19 : vector<2x8x16xf32> to vector<2x8x16xbf16>
    "tpu.trace_start"() <{level = 10 : i32, message = "bnf,bfh->bnh"}> : () -> ()
    %cst_16 = arith.constant dense<0.000000e+00> : vector<2x8x32xf32>
    %21 = tpu.matmul %20, %2, %cst_16 {dimension_numbers = #tpu.dot_dimension_numbers<[2], [1], [1], [2], [0, 0, 0, 1, 1, 2], [0], [0]>} : vector<2x8x16xbf16>, vector<2x16x32xbf16>, vector<2x8x32xf32> -> vector<2x8x32xf32>
    "tpu.trace_stop"() : () -> ()
    %22 = vector.broadcast %6 : vector<2x1x32xf32> to vector<2x8x32xf32>
    %23 = arith.addf %21, %22 : vector<2x8x32xf32>
    %cst_17 = arith.constant 0.000000e+00 : f32
    %24 = vector.broadcast %cst_17 : f32 to vector<2x8x32xf32>
    %25 = arith.cmpf ogt, %23, %24 : vector<2x8x32xf32>
    %cst_18 = arith.constant 0.000000e+00 : f32
    %26 = vector.broadcast %cst_18 : f32 to vector<2x8x32xf32>
    %27 = arith.minimumf %23, %26 : vector<2x8x32xf32>
    %28 = math.exp %27 : vector<2x8x32xf32>
    %cst_19 = arith.constant 1.000000e+00 : f32
    %29 = vector.broadcast %cst_19 : f32 to vector<2x8x32xf32>
    %30 = arith.subf %28, %29 : vector<2x8x32xf32>
    %31 = arith.select %25, %23, %30 : vector<2x8x32xi1>, vector<2x8x32xf32>
    %32 = arith.truncf %31 : vector<2x8x32xf32> to vector<2x8x32xbf16>
    "tpu.trace_start"() <{level = 10 : i32, message = "bnm,bmh->bnh"}> : () -> ()
    %cst_20 = arith.constant dense<0.000000e+00> : vector<2x8x32xf32>
    %33 = tpu.matmul %1, %32, %cst_20 {dimension_numbers = #tpu.dot_dimension_numbers<[2], [1], [1], [2], [0, 0, 0, 1, 1, 2], [0], [0]>} : vector<2x8x8xbf16>, vector<2x8x32xbf16>, vector<2x8x32xf32> -> vector<2x8x32xf32>
    "tpu.trace_stop"() : () -> ()
    %34 = arith.addf %33, %31 : vector<2x8x32xf32>
    %35 = arith.truncf %34 : vector<2x8x32xf32> to vector<2x8x32xbf16>
    "tpu.trace_start"() <{level = 10 : i32, message = "bnh,bhk->bnk"}> : () -> ()
    %cst_21 = arith.constant dense<0.000000e+00> : vector<2x8x32xf32>
    %36 = tpu.matmul %35, %3, %cst_21 {dimension_numbers = #tpu.dot_dimension_numbers<[2], [1], [1], [2], [0, 0, 0, 1, 1, 2], [0], [0]>} : vector<2x8x32xbf16>, vector<2x32x32xbf16>, vector<2x8x32xf32> -> vector<2x8x32xf32>
    "tpu.trace_stop"() : () -> ()
    %37 = vector.broadcast %7 : vector<2x1x32xf32> to vector<2x8x32xf32>
    %38 = arith.addf %36, %37 : vector<2x8x32xf32>
    %cst_22 = arith.constant 0.000000e+00 : f32
    %39 = vector.broadcast %cst_22 : f32 to vector<2x8x32xf32>
    %40 = arith.cmpf ogt, %38, %39 : vector<2x8x32xf32>
    %cst_23 = arith.constant 0.000000e+00 : f32
    %41 = vector.broadcast %cst_23 : f32 to vector<2x8x32xf32>
    %42 = arith.minimumf %38, %41 : vector<2x8x32xf32>
    %43 = math.exp %42 : vector<2x8x32xf32>
    %cst_24 = arith.constant 1.000000e+00 : f32
    %44 = vector.broadcast %cst_24 : f32 to vector<2x8x32xf32>
    %45 = arith.subf %43, %44 : vector<2x8x32xf32>
    %46 = arith.select %40, %38, %45 : vector<2x8x32xi1>, vector<2x8x32xf32>
    %cst_25 = arith.constant dense<0.000000e+00> : vector<2x1xf32>
    %47 = vector.multi_reduction <add>, %16, %cst_25 [1] : vector<2x8x1xf32> to vector<2x1xf32>
    %48 = vector.shape_cast %47 : vector<2x1xf32> to vector<2x1x1xf32>
    %49 = vector.broadcast %16 : vector<2x8x1xf32> to vector<2x8x32xf32>
    %50 = arith.mulf %46, %49 : vector<2x8x32xf32>
    %cst_26 = arith.constant dense<0.000000e+00> : vector<2x32xf32>
    %51 = vector.multi_reduction <add>, %50, %cst_26 [1] : vector<2x8x32xf32> to vector<2x32xf32>
    %52 = vector.shape_cast %51 : vector<2x32xf32> to vector<2x1x32xf32>
    %cst_27 = arith.constant 1.000000e-10 : f32
    %53 = vector.broadcast %cst_27 : f32 to vector<2x1x1xf32>
    %54 = arith.addf %48, %53 : vector<2x1x1xf32>
    %55 = vector.broadcast %54 : vector<2x1x1xf32> to vector<2x1x32xf32>
    %56 = arith.divf %52, %55 : vector<2x1x32xf32>
    %57 = arith.mulf %56, %8 : vector<2x1x32xf32>
    %cst_28 = arith.constant dense<0.000000e+00> : vector<2x1xf32>
    %58 = vector.multi_reduction <add>, %57, %cst_28 [2] : vector<2x1x32xf32> to vector<2x1xf32>
    %c0_29 = arith.constant 0 : index
    %c0_30 = arith.constant 0 : index
    %59 = vector.load %arg7[%c0_29, %c0_30] : memref<2x1xf32, #tpu.memory_space<vmem>>, vector<2x1xf32>
    tpu.vector_store %arg7[%c0_29, %c0_30], %58 {strides = array<i32>} : memref<2x1xf32, #tpu.memory_space<vmem>>, vector<2x1xf32>,
    %60 = vector.broadcast %9 : vector<2x1x32xf32> to vector<2x8x32xf32>
    %61 = arith.mulf %46, %60 : vector<2x8x32xf32>
    %cst_31 = arith.constant dense<0.000000e+00> : vector<2x8xf32>
    %62 = vector.multi_reduction <add>, %61, %cst_31 [2] : vector<2x8x32xf32> to vector<2x8xf32>
    %63 = vector.shape_cast %16 : vector<2x8x1xf32> to vector<2x8xf32>
    %cst_32 = arith.constant 1.000000e+00 : f32
    %64 = vector.broadcast %cst_32 : f32 to vector<2x8xf32>
    %65 = arith.subf %64, %63 : vector<2x8xf32>
    %cst_33 = arith.constant -1.000000e+10 : f32
    %66 = vector.broadcast %cst_33 : f32 to vector<2x8xf32>
    %67 = arith.mulf %66, %65 : vector<2x8xf32>
    %68 = arith.addf %62, %67 : vector<2x8xf32>
    %cst_34 = arith.constant dense<0xFF800000> : vector<2xf32>
    %69 = vector.multi_reduction <maximumf>, %68, %cst_34 [1] : vector<2x8xf32> to vector<2xf32>
    %70 = vector.shape_cast %69 : vector<2xf32> to vector<2x1xf32>
    %71 = vector.broadcast %70 : vector<2x1xf32> to vector<2x8xf32>
    %72 = arith.subf %68, %71 : vector<2x8xf32>
    %73 = math.exp %72 : vector<2x8xf32>
    %cst_35 = arith.constant dense<0.000000e+00> : vector<2xf32>
    %74 = vector.multi_reduction <add>, %73, %cst_35 [1] : vector<2x8xf32> to vector<2xf32>
    %75 = vector.shape_cast %74 : vector<2xf32> to vector<2x1xf32>
    %76 = tpu.reciprocal %75 {approx = true} : vector<2x1xf32> -> vector<2x1xf32>
    %77 = vector.broadcast %76 : vector<2x1xf32> to vector<2x8xf32>
    %78 = arith.mulf %73, %77 : vector<2x8xf32>
    %c0_36 = arith.constant 0 : index
    %c0_37 = arith.constant 0 : index
    %79 = vector.load %arg6[%c0_36, %c0_37] : memref<2x8xf32, #tpu.memory_space<vmem>>, vector<2x8xf32>
    tpu.vector_store %arg6[%c0_36, %c0_37], %78 {strides = array<i32>} : memref<2x8xf32, #tpu.memory_space<vmem>>, vector<2x8xf32>,
    return
  }
  func.func @transform_0(%arg0: i32) -> (i32, i32, i32) {
    %c0_i32 = arith.constant 0 : i32
    %c0_i32_0 = arith.constant 0 : i32
    %c0_i32_1 = arith.constant 0 : i32
    return %arg0, %c0_i32, %c0_i32_0 : i32, i32, i32
  }
  func.func @transform_1(%arg0: i32) -> (i32, i32, i32) {
    %c0_i32 = arith.constant 0 : i32
    %c0_i32_0 = arith.constant 0 : i32
    %c0_i32_1 = arith.constant 0 : i32
    return %arg0, %c0_i32, %c0_i32_0 : i32, i32, i32
  }
  func.func @transform_2(%arg0: i32) -> (i32, i32, i32) {
    %c0_i32 = arith.constant 0 : i32
    %c0_i32_0 = arith.constant 0 : i32
    %c0_i32_1 = arith.constant 0 : i32
    return %arg0, %c0_i32, %c0_i32_0 : i32, i32, i32
  }
  func.func @transform_3(%arg0: i32) -> (i32, i32, i32) {
    %c0_i32 = arith.constant 0 : i32
    %c0_i32_0 = arith.constant 0 : i32
    %c0_i32_1 = arith.constant 0 : i32
    return %arg0, %c0_i32, %c0_i32_0 : i32, i32, i32
  }
  func.func @transform_4(%arg0: i32) -> (i32, i32, i32) {
    %c0_i32 = arith.constant 0 : i32
    %c0_i32_0 = arith.constant 0 : i32
    %c0_i32_1 = arith.constant 0 : i32
    return %arg0, %c0_i32, %c0_i32_0 : i32, i32, i32
  }
  func.func @transform_5(%arg0: i32) -> (i32, i32) {
    %c0_i32 = arith.constant 0 : i32
    %c0_i32_0 = arith.constant 0 : i32
    return %arg0, %c0_i32 : i32, i32
  }
  func.func @transform_6(%arg0: i32) -> (i32, i32) {
    %c0_i32 = arith.constant 0 : i32
    %c0_i32_0 = arith.constant 0 : i32
    return %arg0, %c0_i32 : i32, i32
  }
}

</mosaic_0001>

<bundles_post_ra>
// kernel: tpu_custom_call.1
= control target key start
LH: loop header
LB: loop body
LE: loop exit
PB: predicated region body
PF: predicated region fallthrough
CT: control target
= control target key end

     0   :  { %12 = vsyncpa [#allocation3], 0  ;;  %s1242_s0 = inlined_call_operand.hbm [shape: bf16[2,8,16], index: 0, kind: input, shape index: {}]   ;;  %s1243_s1 = inlined_call_operand.hbm [shape: bf16[2,8,8], index: 1, kind: input, shape index: {}]   ;;  %s1244_s2 = inlined_call_operand.hbm [shape: bf16[2,16,32], index: 2, kind: input, shape index: {}]   ;;  %s1245_s3 = inlined_call_operand.hbm [shape: bf16[2,32,32], index: 3, kind: input, shape index: {}]   ;;  %s1246_s4 = inlined_call_operand.vmem [shape: bf16[2,1,128], index: 4, kind: input, shape index: {}]   ;;  %s1247_s5 = inlined_call_operand.hbm [shape: f32[2,8], index: 5, kind: output, shape index: {0}]   ;;  %s1248_s6 = inlined_call_operand.vmem [shape: f32[2,1], index: 6, kind: output, shape index: {1}]  }
   0x1   :  { %13 = vsyncpa [#allocation6], 0 }
   0x2   :  { %14 = vsyncpa [#allocation9], 0 }
   0x3   :  { %15 = vsyncpa [#allocation4], 0  ;;  %s1006_s21 = smov [#allocation5]   ;;  %s1007_s23 = smov [#allocation2]  }
   0x4   :  { %s33_s22 = sshll.u32 %s1006_s21, 4  ;;  %s21_s24 = sshll.u32 %s1007_s23, 4  ;;  %s34_s22 = int_to_ptr.vmem [resolvable:$true] %s33_s22  ;;  %s1053_s24 = int_to_ptr.vmem [resolvable:$true] %s21_s24 }
   0x5   :  { %s888_s27 = scalar_lea.hbm %s1243_s1, 128 }
   0x6   :  { %p889_p0 = scmp.ne.s32.totalorder %s1243_s1, %s888_s27  ;;  %p892_p1 = scmp.lt.u32.totalorder %s888_s27, %s1243_s1 }
   0x8   :  { %p894_p2 = pnand %p892_p1, %p889_p0 }
   0xa   :  { %897 = shalt.err (!%p894_p2)
}
   0xb   :  { %s898_s8 = scalar_lea.vmem %s34_s22, 128  ;;  %p903_p4 = scmp.lt.s32.totalorder %s34_s22, %s34_s22 }
   0xc   :  { %p899_p3 = scmp.ne.s32.totalorder %s34_s22, %s898_s8  ;;  %p904_p5 = scmp.lt.s32.totalorder %s898_s8, %s898_s8 }
   0xe   :  { %p905_p6 = por %p904_p5, %p903_p4 }
  0x10   :  { %p906_p7 = pnand %p905_p6, %p899_p3 }
  0x12   :  { %909 = shalt.err (!%p906_p7)
}
  0x13   :  { %s1008_s9 = smov 64   ;;  %s1009_s10 = smov 4  }
  0x14   :  { %39 = dma.hbm_to_vmem [thread:$0]  %s1243_s1, 128, %s34_s22, [#allocation6], %s1008_s9, %s1008_s9, %s1009_s10  }
  0x15   :  { %s910_s15 = scalar_lea.hbm %s1242_s0, 128 }
  0x16   :  { %p911_p8 = scmp.ne.s32.totalorder %s1242_s0, %s910_s15  ;;  %p914_p9 = scmp.lt.u32.totalorder %s910_s15, %s1242_s0 }
  0x18   :  { %p916_p10 = pnand %p914_p9, %p911_p8 }
  0x1a   :  { %919 = shalt.err (!%p916_p10)
}
  0x1b   :  { %s920_s20 = scalar_lea.vmem %s1053_s24, 128  ;;  %p925_p12 = scmp.lt.s32.totalorder %s1053_s24, %s1053_s24 }
  0x1c   :  { %p921_p11 = scmp.ne.s32.totalorder %s1053_s24, %s920_s20  ;;  %p926_p13 = scmp.lt.s32.totalorder %s920_s20, %s920_s20 }
  0x1e   :  { %p927_p0 = por %p926_p13, %p925_p12 }
  0x20   :  { %p928_p1 = pnand %p927_p0, %p921_p11 }
  0x22   :  { %931 = shalt.err (!%p928_p1)
}
  0x23   :  { %27 = dma.hbm_to_vmem [thread:$0]  %s1242_s0, 128, %s1053_s24, [#allocation3], %s1008_s9, %s1008_s9, %s1009_s10  }
  0x24   :  { %s1010_s22 = smov [#allocation7]   ;;  %s1011_s25 = smov [#allocation8]  }
  0x25   :  { %s45_s23 = sshll.u32 %s1010_s22, 4  ;;  %s57_s26 = sshll.u32 %s1011_s25, 4  ;;  %s46_s23 = int_to_ptr.vmem [resolvable:$true] %s45_s23  ;;  %s1090_s26 = int_to_ptr.vmem [resolvable:$true] %s57_s26 }
  0x26   :  { %s932_s29 = scalar_lea.hbm %s1244_s2, 256 }
  0x27   :  { %p933_p2 = scmp.ne.s32.totalorder %s1244_s2, %s932_s29  ;;  %p936_p3 = scmp.lt.u32.totalorder %s932_s29, %s1244_s2 }
  0x29   :  { %p938_p4 = pnand %p936_p3, %p933_p2 }
  0x2b   :  { %941 = shalt.err (!%p938_p4)
}
  0x2c   :  { %s942_s0 = scalar_lea.vmem %s46_s23, 256  ;;  %p947_p6 = scmp.lt.s32.totalorder %s46_s23, %s46_s23 }
  0x2d   :  { %p943_p5 = scmp.ne.s32.totalorder %s46_s23, %s942_s0  ;;  %p948_p7 = scmp.lt.s32.totalorder %s942_s0, %s942_s0 }
  0x2f   :  { %p949_p8 = por %p948_p7, %p947_p6 }
  0x31   :  { %p950_p9 = pnand %p949_p8, %p943_p5 }
  0x33   :  { %953 = shalt.err (!%p950_p9)
}
  0x34   :  { %51 = dma.hbm_to_vmem [thread:$0]  %s1244_s2, 256, %s46_s23, [#allocation6], %s1008_s9, %s1008_s9, %s1009_s10  }
  0x35   :  { %s954_s15 = scalar_lea.hbm %s1245_s3, 512 }
  0x36   :  { %p955_p10 = scmp.ne.s32.totalorder %s1245_s3, %s954_s15  ;;  %p958_p11 = scmp.lt.u32.totalorder %s954_s15, %s1245_s3 }
  0x38   :  { %p960_p12 = pnand %p958_p11, %p955_p10 }
  0x3a   :  { %963 = shalt.err (!%p960_p12)
}
  0x3b   :  { %s964_s20 = scalar_lea.vmem %s1090_s26, 512  ;;  %p969_p0 = scmp.lt.s32.totalorder %s1090_s26, %s1090_s26 }
  0x3c   :  { %p965_p13 = scmp.ne.s32.totalorder %s1090_s26, %s964_s20  ;;  %p970_p1 = scmp.lt.s32.totalorder %s964_s20, %s964_s20 }
  0x3e   :  { %p971_p2 = por %p970_p1, %p969_p0 }
  0x40   :  { %p972_p3 = pnand %p971_p2, %p965_p13 }
  0x42   :  { %975 = shalt.err (!%p972_p3)
}
  0x43   :  { %63 = dma.hbm_to_vmem [thread:$0]  %s1245_s3, 512, %s1090_s26, [#allocation9], %s1008_s9, %s1008_s9, %s1009_s10  }
  0x44   :  { %998 = dma.done.wait [#allocation3], 128  }
  0x45   :  { %999 = vsyncadd [#allocation3], 4294967168 }
  0x46   :  { %1000 = dma.done.wait [#allocation6], 384  }
  0x47   :  { %1001 = vsyncadd [#allocation6], 4294966912 }
  0x48   :  { %1002 = dma.done.wait [#allocation9], 512  }
  0x49   :  { %1003 = vsyncadd [#allocation9], 4294966784  ;;  %v1012_v0 = vmov 0.0   ;;  %vm1013_vm0 = vmmov 0   ;;  %vm119_vm1 = vcmask 1043456   ;;  %vm101_vm2 = vcmask 64512  }
  0x4a   :  { %786 = vmatprep.subr.bf16.mxu0 %v1012_v0  ;;  %792 = vmatprep.subr.bf16.mxu1 %v1012_v0  ;;  %v79_v1 = vld [vmem:[#allocation2] sm:$0xf]  ;;  %v80_v2 = vld [vmem:[#allocation2 + $0x4] sm:$0xf]  ;;  %v1133_v3 = vld [vmem:[#allocation5] sm:$0xf]  ;;  %v211_v23 = vlaneseq }
  0x4b   :  { %788 = vmatprep.mubr.msk.bf16.mxu0 %vm1013_vm0, %v1012_v0  ;;  %794 = vmatprep.mubr.msk.bf16.mxu1 %vm1013_vm0, %v1012_v0  ;;  %v121_v4 = vsel %vm119_vm1, %v79_v1, 0  ;;  %v167_v5 = vsel %vm119_vm1, %v80_v2, 0  ;;  %v1137_v6 = vld [vmem:[#allocation5 + $0x4] sm:$0xf]  ;;  %v862_v7 = vld [vmem:[#allocation7] sm:$0xff]   ;;  %v863_v8 = vld [vmem:[#allocation7 + $0x8] sm:$0xff]   ;;  %v114_v9 = vunpack.c.l.bf16 %v79_v1  ;;  %v115_v10 = vunpack.c.l.bf16 %v80_v2 }
  0x4c   :  { %787 = vmatpush3.bf16.msra.mxu0 %v121_v4  ;;  %793 = vmatpush3.bf16.msra.mxu1 %v167_v5  ;;  %vm225_vm3 = vcmask 130048   ;;  %v1156_v24 = vshrl.u32 %v211_v23, 7  ;;  %v95_v25 = vld [vmem:[%s1246_s4] sm:$0x1]  ;;  %v96_v26 = vld [vmem:[%s1246_s4 + $0x1] sm:$0x1]  ;;  %v99_v60 = vunpack.c.l.bf16 %v1133_v3  ;;  %v100_v61 = vunpack.c.l.bf16 %v1137_v6 }
  0x4d   :  { %798 = vmatprep.subr.bf16.mxu0 %v1012_v0  ;;  %804 = vmatprep.subr.bf16.mxu1 %v1012_v0  ;;  %v97_v27 = vunpack.c.l.bf16 %v95_v25  ;;  %v98_v29 = vunpack.c.l.bf16 %v96_v26  ;;  %v864_v56 = vld [vmem:[#allocation8] sm:$0xff]   ;;  %v865_v57 = vld [vmem:[#allocation8 + $0x10] sm:$0xff]   ;;  %v866_v58 = vld [vmem:[#allocation8 + $0x8] sm:$0xff]   ;;  %s1014_s4 = smov 96   ;;  %s1015_s23 = smov 32   ;;  %vm436_vm6 = vcmask 261120  }
  0x4e   :  { %v1165_v28 = vsub.s32 0, %v1156_v24  ;;  %v867_v59 = vld [vmem:[#allocation8 + $0x18] sm:$0xff]   ;;  %v102_v63 = vsel %vm101_vm2, %v99_v60, -inf  ;;  %v105_v1 = vsel %vm101_vm2, %v100_v61, -inf  ;;  %vm613_vm11 = vcmask 1041409   ;;  %s1017_s26 = smov [#allocation10]  }
  0x4f   :  { %789 = vmatmul.mubr.msk.bf16.vlgmr.msra.gmra.mrb[0].mxu0 %vm101_vm2, %v1133_v3  ;;  %795 = vmatmul.mubr.msk.bf16.vlgmr.msra.gmra.mrb[0].mxu1 %vm101_vm2, %v1137_v6  ;;  %vm652_vm12 = vcmask 58368   ;;  %vm603_vm13 = vcmask 253952   ;;  %vm616_vm14 = vcmask 1024   ;;  %s733_s27 = sshll.u32 %s1017_s26, 4  ;;  %s734_s27 = int_to_ptr.vmem [resolvable:$true] %s733_s27 }
  0x50   :  { %800 = vmatprep.mubr.msk.bf16.mxu0 %vm1013_vm0, %v1012_v0  ;;  %806 = vmatprep.mubr.msk.bf16.mxu1 %vm1013_vm0, %v1012_v0  ;;  %v1168_v30 = vrot.slane %v97_v27, %v1165_v28  ;;  %v1171_v31 = vrot.slane %v98_v29, %v1165_v28  ;;  %p981_p5 = scmp.lt.s32.totalorder %s734_s27, %s734_s27 }
  0x51   :  { %799 = vmatpush3.bf16.msra.mxu0 %v862_v7  ;;  %805 = vmatpush3.bf16.msra.mxu1 %v863_v8 }
  0x52   :  { %810 = vmatprep.subr.bf16.mxu0 %v1012_v0  ;;  %816 = vmatprep.subr.bf16.mxu1 %v1012_v0  ;;  %v850_v62 = vpack.i.bf16 %v1171_v31, %v1168_v30 }
  0x53   :  { %103 = vmax.xlane.f32.xlu1 %v102_v63 }
  0x54   :  { %851 = vrot.lane.b32.xlu0 %v850_v62, %s1014_s4 }
  0x57   :  { %106 = vmax.xlane.f32.xlu1 %v105_v1 }
  0x58   :  { %856 = vrot.lane.b32.xlu0 %v850_v62, %s1015_s23 }
 0x122   :  { %v157_v11 = vpop.f32.mrb[0].mxu0  ;;  %v203_v12 = vpop.f32.mrb[0].mxu1 }
 0x123   :  { %v158_v13 = vadd.f32 %v157_v11, %v114_v9  ;;  %v204_v14 = vadd.f32 %v203_v12, %v115_v10  ;;  %v790_v15 = vpop.f32.mrb[1].mxu0  ;;  %v796_v16 = vpop.f32.mrb[1].mxu1 }
 0x124   :  { %v160_v17 = vpop.f32.mrb[2].mxu0  ;;  %v206_v18 = vpop.f32.mrb[2].mxu1 }
 0x125   :  { %v209_v19 = vpack.c.bf16 %v158_v13, %v158_v13  ;;  %v210_v20 = vpack.c.bf16 %v204_v14, %v204_v14  ;;  %v791_v21 = vpop.f32.mrb[3].mxu0  ;;  %v797_v22 = vpop.f32.mrb[3].mxu1 }
 0x126   :  { %v852_v14 = vpop.permute.xlu0 %851 }
 0x127   :  { %801 = vmatmul.mubr.msk.bf16.vlgmr.msra.gmra.mrb[4].mxu0 %vm225_vm3, %v209_v19  ;;  %807 = vmatmul.mubr.msk.bf16.vlgmr.msra.gmra.mrb[4].mxu1 %vm225_vm3, %v210_v20 }
 0x128   :  { %812 = vmatprep.mubr.msk.bf16.mxu0 %vm1013_vm0, %v1012_v0  ;;  %818 = vmatprep.mubr.msk.bf16.mxu1 %vm1013_vm0, %v1012_v0 }
 0x1fa   :  { %v263_v32 = vpop.f32.mrb[4].mxu0  ;;  %v312_v33 = vpop.f32.mrb[4].mxu1 }
 0x1fb   :  { %v264_v34 = vadd.f32 %v263_v32, %v1168_v30  ;;  %v313_v35 = vadd.f32 %v312_v33, %v1171_v31  ;;  %v802_v36 = vpop.f32.mrb[5].mxu0  ;;  %v808_v37 = vpop.f32.mrb[5].mxu1 }
 0x1fc   :  { %v266_v38 = vpop.f32.mrb[6].mxu0  ;;  %v315_v39 = vpop.f32.mrb[6].mxu1 }
 0x1fd   :  { %v320_v40 = vmin.f32 %v264_v34, 0.0  ;;  %v321_v41 = vmin.f32 %v313_v35, 0.0  ;;  %v803_v42 = vpop.f32.mrb[7].mxu0  ;;  %v809_v43 = vpop.f32.mrb[7].mxu1  ;;  %vm318_vm4 = vcmp.gt.f32.partialorder %v264_v34, 0.0  ;;  %vm319_vm5 = vcmp.gt.f32.partialorder %v313_v35, 0.0 }
 0x1ff   :  { %v322_v44 = vmul.f32 1.442695, %v320_v40  ;;  %v324_v45 = vmul.f32 1.442695, %v321_v41 }
 0x201   :  { %868 = vpow2.f32 %v322_v44 }
 0x202   :  { %870 = vpow2.f32 %v324_v45 }
 0x20b   :  { %v869_v46 = vpop.eup %868 }
 0x20c   :  { %v871_v47 = vpop.eup %870  ;;  %v756_v48 = vadd.f32 -1.0, %v869_v46 }
 0x20d   :  { %v757_v49 = vadd.f32 -1.0, %v871_v47  ;;  %v104_v47 = vpop.xlane.xlu1 %103 }
 0x20e   :  { %v328_v50 = vsel %vm318_vm4, %v264_v34, %v756_v48  ;;  %v857_v34 = vpop.permute.xlu0 %856  ;;  %vm108_vm10 = vcmp.gt.f32.partialorder %v104_v47, 0.0 }
 0x20f   :  { %v329_v51 = vsel %vm319_vm5, %v313_v35, %v757_v49  ;;  %v330_v52 = vpack.c.bf16 %v328_v50, %v328_v50  ;;  %v858_v36 = vunpack.i.l.bf16 %v857_v34  ;;  %v859_v38 = vunpack.i.h.bf16 %v857_v34 }
 0x210   :  { %v331_v53 = vpack.c.bf16 %v329_v51, %v329_v51 }
 0x211   :  { %v333_v54 = vsel %vm119_vm1, %v330_v52, 0  ;;  %v107_v48 = vpop.xlane.xlu1 %106 }
 0x212   :  { %811 = vmatpush3.bf16.msra.mxu0 %v333_v54  ;;  %v376_v55 = vsel %vm119_vm1, %v331_v53, 0  ;;  %vm109_vm9 = vcmp.gt.f32.partialorder %v107_v48, 0.0 }
 0x213   :  { %817 = vmatpush3.bf16.msra.mxu1 %v376_v55  ;;  %822 = vmatprep.subr.bf16.mxu0 %v1012_v0  ;;  %v749_v49 = vsel %vm109_vm9, 1.0, %v1012_v0 }
 0x214   :  { %830 = vmatprep.subr.bf16.mxu1 %v1012_v0 }
 0x215   :  { %813 = vmatmul.mubr.msk.bf16.vlgmr.msra.gmra.mrb[8].mxu0 %vm101_vm2, %v1133_v3 }
 0x216   :  { %819 = vmatmul.mubr.msk.bf16.vlgmr.msra.gmra.mrb[8].mxu1 %vm101_vm2, %v1137_v6  ;;  %823 = vmatpush3.bf16.msra.mxu0 %v864_v56 }
 0x217   :  { %831 = vmatpush3.bf16.msra.mxu1 %v865_v57  ;;  %824 = vmatprep.subr.bf16.mxu0 %v1012_v0 }
 0x218   :  { %832 = vmatprep.subr.bf16.mxu1 %v1012_v0  ;;  %826 = vmatprep.mubr.msk.bf16.mxu0 %vm1013_vm0, %v1012_v0 }
 0x219   :  { %834 = vmatprep.mubr.msk.bf16.mxu1 %vm1013_vm0, %v1012_v0 }
 0x21a   :  { %825 = vmatpush3.bf16.msra.mxu0 %v866_v58 }
 0x21b   :  { %833 = vmatpush3.bf16.msra.mxu1 %v867_v59 }
 0x2e8   :  { %v369_v2 = vpop.f32.mrb[8].mxu0 }
 0x2e9   :  { %v370_v4 = vadd.f32 %v369_v2, %v328_v50  ;;  %v412_v5 = vpop.f32.mrb[8].mxu1  ;;  %v814_v7 = vpop.f32.mrb[9].mxu0  ;;  %v557_v50 = vrot.slane %v749_v49, 4 }
 0x2ea   :  { %v413_v3 = vadd.f32 %v412_v5, %v329_v51  ;;  %v820_v8 = vpop.f32.mrb[9].mxu1  ;;  %v372_v6 = vpop.f32.mrb[10].mxu0  ;;  %v748_v51 = vsel %vm108_vm10, 1.0, %v1012_v0 }
 0x2eb   :  { %v418_v9 = vpack.c.bf16 %v370_v4, %v370_v4  ;;  %v415_v10 = vpop.f32.mrb[10].mxu1  ;;  %v815_v11 = vpop.f32.mrb[11].mxu0  ;;  %v551_v52 = vrot.slane %v748_v51, 4  ;;  %v558_v53 = vadd.f32 %v749_v49, %v557_v50 }
 0x2ec   :  { %v419_v12 = vpack.c.bf16 %v413_v3, %v413_v3  ;;  %v821_v13 = vpop.f32.mrb[11].mxu1  ;;  %v633_v10 = vsub.f32 1.0, %v749_v49  ;;  %v641_v11 = vand.u32 127, %v211_v23 }
 0x2ed   :  { %827 = vmatmul.mubr.msk.bf16.vlgmr.msra.gmra.mrb[12].mxu0 %vm436_vm6, %v418_v9  ;;  %v552_v54 = vadd.f32 %v748_v51, %v551_v52  ;;  %v559_v55 = vrot.slane %v558_v53, 2 }
 0x2ee   :  { %835 = vmatmul.mubr.msk.bf16.vlgmr.msra.gmra.mrb[12].mxu1 %vm436_vm6, %v419_v12  ;;  %v632_v12 = vsub.f32 1.0, %v748_v51 }
 0x2ef   :  { %v553_v57 = vrot.slane %v552_v54, 2  ;;  %v560_v58 = vadd.f32 %v559_v55, %v558_v53 }
 0x2f1   :  { %v561_v60 = vrot.slane %v560_v58, 1 }
 0x2f3   :  { %v562_v1 = vadd.f32 %v561_v60, %v560_v58 }
 0x2f5   :  { %v580_v5 = vadd.f32 1e-10, %v562_v1 }
 0x3c0   :  { %v474_v15 = vpop.f32.mrb[12].mxu0 }
 0x3c1   :  { %v886_v16 = vadd.low.f32.bf16 %v474_v15, %v852_v14  ;;  %v533_v17 = vpop.f32.mrb[12].mxu1  ;;  %v828_v18 = vpop.f32.mrb[13].mxu0  ;;  %v635_v15 = vmul.f32 -1e+10, %v633_v10 }
 0x3c2   :  { %v887_v19 = vadd.high.f32.bf16 %v533_v17, %v852_v14  ;;  %v836_v20 = vpop.f32.mrb[13].mxu1  ;;  %v477_v21 = vpop.f32.mrb[14].mxu0  ;;  %v634_v17 = vmul.f32 -1e+10, %v632_v12 }
 0x3c3   :  { %v541_v22 = vmin.f32 %v886_v16, 0.0  ;;  %v536_v25 = vpop.f32.mrb[14].mxu1  ;;  %v829_v26 = vpop.f32.mrb[15].mxu0  ;;  %vm539_vm7 = vcmp.gt.f32.partialorder %v886_v16, 0.0 }
 0x3c4   :  { %v542_v27 = vmin.f32 %v887_v19, 0.0  ;;  %v837_v29 = vpop.f32.mrb[15].mxu1  ;;  %vm540_vm8 = vcmp.gt.f32.partialorder %v887_v19, 0.0 }
 0x3c5   :  { %v543_v32 = vmul.f32 1.442695, %v541_v22 }
 0x3c6   :  { %v545_v33 = vmul.f32 1.442695, %v542_v27 }
 0x3c7   :  { %872 = vpow2.f32 %v543_v32 }
 0x3c8   :  { %874 = vpow2.f32 %v545_v33 }
 0x3c9   :  { %876 = vrcp.f32 %v580_v5 }
 0x3d1   :  { %v873_v35 = vpop.eup %872 }
 0x3d2   :  { %v875_v37 = vpop.eup %874  ;;  %v766_v39 = vadd.f32 -1.0, %v873_v35 }
 0x3d3   :  { %v767_v40 = vadd.f32 -1.0, %v875_v37  ;;  %v877_v20 = vpop.eup %876 }
 0x3d4   :  { %v549_v41 = vsel %vm539_vm7, %v886_v16, %v766_v39  ;;  %v1209_v16 = vsub.s32 %v641_v11, %v1156_v24 }
 0x3d5   :  { %v550_v42 = vsel %vm540_vm8, %v887_v19, %v767_v40  ;;  %v624_v43 = vmul.f32 %v858_v36, %v549_v41  ;;  %v563_v59 = vmul.f32 %v748_v51, %v549_v41 }
 0x3d6   :  { %v625_v44 = vmul.f32 %v859_v38, %v550_v42  ;;  %v564_v56 = vmul.f32 %v749_v49, %v550_v42 }
 0x3d7   :  { %v626_v45 = vsel %vm436_vm6, %v624_v43, 0.0  ;;  %v565_v62 = vsel %vm436_vm6, %v563_v59, 0.0  ;;  %v1016_v43 = vmov 0  }
 0x3d8   :  { %v629_v46 = vsel %vm436_vm6, %v625_v44, 0.0  ;;  %627 = vadd.xlane.f32.xlu0 %v626_v45  ;;  %v566_v4 = vrot.slane %v565_v62, 4  ;;  %860 = vset.pattern.permute.xlu1 %v1016_v43  ;;  %v663_v44 = vsub.s32 1, %v1156_v24 }
 0x3d9   :  { %630 = vadd.xlane.f32.xlu1 %v629_v46  ;;  %861 = vset.pattern.permute.xlu0 %v1016_v43 }
 0x3da   :  { %v567_v7 = vadd.f32 %v566_v4, %v565_v62 }
 0x3dc   :  { %v568_v9 = vrot.slane %v567_v7, 2 }
 0x3de   :  { %v569_v14 = vadd.f32 %v568_v9, %v567_v7 }
 0x3e0   :  { %v570_v19 = vrot.slane %v569_v14, 1 }
 0x3e2   :  { %v571_v23 = vadd.f32 %v570_v19, %v569_v14 }
 0x3ee   :  { %597 = vrot.lane.b32.xlu0 %v1171_v31, %s1008_s9  ;;  %v572_v31 = vsel %vm436_vm6, %v564_v56, 0.0 }
 0x3ef   :  { %v573_v61 = vrot.slane %v572_v31, 4 }
 0x3f1   :  { %v574_v2 = vadd.f32 %v573_v61, %v572_v31 }
 0x3f2   :  { %595 = vrot.lane.b32.xlu0 %v1168_v30, %s1008_s9  ;;  %v554_v30 = vadd.f32 %v553_v57, %v552_v54 }
 0x3f3   :  { %v575_v3 = vrot.slane %v574_v2, 2 }
 0x3f4   :  { %v555_v63 = vrot.slane %v554_v30, 1 }
 0x3f5   :  { %v576_v6 = vadd.f32 %v575_v3, %v574_v2 }
 0x3f6   :  { %v556_v0 = vadd.f32 %v555_v63, %v554_v30 }
 0x3f7   :  { %v577_v13 = vrot.slane %v576_v6, 1 }
 0x3f8   :  { %v579_v8 = vadd.f32 1e-10, %v556_v0 }
 0x3f9   :  { %v578_v18 = vadd.f32 %v577_v13, %v576_v6 }
 0x3fa   :  { %878 = vrcp.f32 %v579_v8 }
 0x3fb   :  { %v584_v29 = vmul.f32 %v877_v20, %v578_v18 }
 0x404   :  { %v879_v32 = vpop.eup %878 }
 0x405   :  { %v582_v39 = vmul.f32 %v879_v32, %v571_v23 }
 0x465   :  { %v628_v21 = vpop.xlane.xlu0 %627 }
 0x466   :  { %v631_v22 = vpop.xlane.xlu1 %630  ;;  %v636_v25 = vadd.f32 %v634_v17, %v628_v21 }
 0x467   :  { %v637_v26 = vadd.f32 %v635_v15, %v631_v22 }
 0x468   :  { %v645_v27 = vrot.slane %v636_v25, %v1209_v16 }
 0x469   :  { %v649_v33 = vrot.slane %v637_v26, %v1209_v16  ;;  %v598_v34 = vpop.permute.xlu0 %597 }
 0x46a   :  { %v602_v35 = vmul.f32 %v598_v34, %v584_v29 }
 0x46b   :  { %v650_v36 = vsel %vm613_vm11, %v649_v33, %v645_v27 }
 0x46c   :  { %v653_v37 = vsel %vm652_vm12, %v650_v36, -inf  ;;  %v607_v38 = vsel %vm603_vm13, %v602_v35, 0.0 }
 0x46d   :  { %654 = vmax.xlane.f32.xlu1 %v653_v37  ;;  %608 = vadd.xlane.f32.xlu0 %v607_v38  ;;  %v596_v40 = vpop.permute.xlu0 %595 }
 0x46e   :  { %v601_v41 = vmul.f32 %v596_v40, %v582_v39 }
 0x470   :  { %v604_v42 = vsel %vm603_vm13, %v601_v41, 0.0 }
 0x4fa   :  { %v655_v45 = vpop.xlane.xlu1 %654  ;;  %v609_v31 = vpop.xlane.xlu0 %608 }
 0x4fb   :  { %v660_v46 = vrot.slane %v655_v45, %v1165_v28  ;;  %v664_v47 = vrot.slane %v655_v45, %v663_v44  ;;  %v612_v30 = vrot.slane %v609_v31, 7 }
 0x4fd   :  { %v667_v48 = vsub.f32 %v636_v25, %v660_v46  ;;  %v668_v49 = vsub.f32 %v637_v26, %v664_v47 }
 0x4ff   :  { %v669_v50 = vmul.f32 1.442695, %v667_v48  ;;  %v671_v51 = vmul.f32 1.442695, %v668_v49 }
 0x501   :  { %880 = vpow2.f32 %v669_v50 }
 0x502   :  { %882 = vpow2.f32 %v671_v51 }
 0x50b   :  { %v881_v52 = vpop.eup %880 }
 0x50c   :  { %676 = vperm.xlu1 %860, %v881_v52   ;;  %v883_v53 = vpop.eup %882 }
 0x510   :  { %679 = vperm.xlu1 %860, %v883_v53  }
 0x58b   :  { %v677_v54 = vpop.permute.xlu1 %676 }
 0x58c   :  { %v684_v56 = vrot.slane %v677_v54, %v1209_v16 }
 0x58f   :  { %v680_v55 = vpop.permute.xlu1 %679 }
 0x590   :  { %v688_v24 = vrot.slane %v680_v55, %v1209_v16 }
 0x592   :  { %v689_v57 = vsel %vm613_vm11, %v688_v24, %v684_v56 }
 0x593   :  { %v691_v58 = vsel %vm652_vm12, %v689_v57, 0.0 }
 0x594   :  { %692 = vadd.xlane.f32.xlu1 %v691_v58 }
 0x598   :  { %605 = vadd.xlane.f32.xlu1 %v604_v42 }
 0x621   :  { %v693_v59 = vpop.xlane.xlu1 %692 }
 0x622   :  { %884 = vrcp.f32 %v693_v59 }
 0x625   :  { %v606_v60 = vpop.xlane.xlu1 %605 }
 0x626   :  { %v614_v61 = vsel %vm613_vm11, %v612_v30, %v606_v60 }
 0x627   :  { %617 = vst.msk [vmem:[%s1248_s6] sm:$0x3] %vm616_vm14, %v614_v61  ;;  %s976_s6 = scalar_lea.vmem %s734_s27, 32 }
 0x628   :  { %p977_p4 = scmp.ne.s32.totalorder %s734_s27, %s976_s6  ;;  %p982_p6 = scmp.lt.s32.totalorder %s976_s6, %s976_s6 }
 0x62a   :  { %p983_p7 = por %p982_p6, %p981_p5 }
 0x62c   :  { %v885_v62 = vpop.eup %884  ;;  %p984_p8 = pnand %p983_p7, %p977_p4 }
 0x62d   :  { %v699_v63 = vrot.slane %v885_v62, %v1165_v28  ;;  %v703_v2 = vrot.slane %v885_v62, %v663_v44 }
 0x62f   :  { %v706_v1 = vmul.f32 %v881_v52, %v699_v63  ;;  %v707_v4 = vmul.f32 %v883_v53, %v703_v2 }
 0x631   :  { %711 = vperm.xlu1 %860, %v706_v1  }
 0x635   :  { %714 = vperm.xlu1 %860, %v707_v4  }
 0x6b0   :  { %v712_v0 = vpop.permute.xlu1 %711 }
 0x6b1   :  { %v719_v7 = vrot.slane %v712_v0, %v1209_v16 }
 0x6b4   :  { %v715_v5 = vpop.permute.xlu1 %714 }
 0x6b5   :  { %v723_v3 = vrot.slane %v715_v5, %v1209_v16 }
 0x6b7   :  { %v724_v8 = vsel %vm613_vm11, %v723_v3, %v719_v7 }
 0x6b8   :  { %726 = vst.msk [vmem:[#allocation10] sm:$0x3] %vm652_vm12, %v724_v8 }
 0x6b9   :  { %987 = shalt.err (!%p984_p8)
}
 0x6ba   :  { %s988_s30 = scalar_lea.hbm %s1247_s5, 32 }
 0x6bb   :  { %p989_p9 = scmp.ne.s32.totalorder %s1247_s5, %s988_s30  ;;  %p992_p10 = scmp.lt.u32.totalorder %s988_s30, %s1247_s5 }
 0x6bd   :  { %p994_p11 = pnand %p992_p10, %p989_p9 }
 0x6bf   :  { %997 = shalt.err (!%p994_p11)
}
 0x6c0   :  { %736 = dma.vmem_to_hbm [thread:$0]  %s734_s27, 32, %s1247_s5, [#allocation4]  }
 0x6c1   :  { %1004 = dma.done.wait [#allocation4], 32  }
 0x6c2   :  { %1005 = vsyncadd [#allocation4], 4294967264 }
 0x6c3   :  { %744 = vsyncpa [#allocation3], 1 }
 0x6c4   :  { %745 = vsyncpa [#allocation6], 1 }
 0x6c5   :  { %746 = vsyncpa [#allocation9], 1 }
 0x6c6   :  { %747 = vsyncpa [#allocation4], 1 }

</bundles_post_ra>
